<compile_context>
chip_gen: v7x
topology: tpu7x:2x2x1
jax: 0.10.0
libtpu: 0.0.40
codegen_flags: <defaults>
</compile_context>

<pallas_src>
import functools

import jax
import jax.numpy as jnp
from jax import lax
from jax.experimental import pallas as pl
from jax.experimental.pallas import tpu as pltpu


def _round_up(x, m):
    return ((x + m - 1) // m) * m


def _classify_kernel(feat_ref, w_ref, b_ref, out_ref):
    """One grid step = one tile of TM detections.

    feat_ref : (E, TM)     bf16  gathered feature columns (detections in lanes)
    w_ref    : (E, C_pad)  bf16  classifier weight, transposed + lane-padded
    b_ref    : (1, C_pad)  f32   classifier bias (padded lanes hold -1e30)
    out_ref  : (TM, C_pad) bf16  softmax(feat^T @ W + b)
    """
    # Contract dim 0 of both operands: (E, TM) x (E, C_pad) -> (TM, C_pad).
    logits = lax.dot_general(
        feat_ref[...], w_ref[...],
        dimension_numbers=(((0,), (0,)), ((), ())),
        preferred_element_type=jnp.float32,
    ) + b_ref[...]                                            # f32 (TM, C_pad)
    m = jnp.max(logits, axis=-1, keepdims=True)
    e = jnp.exp(logits - m)                     # padded lanes: exp(-1e30 - m) == 0
    s = jnp.sum(e, axis=-1, keepdims=True)
    probs = e * pl.reciprocal(s, approx=True)   # EUP reciprocal, VALU stays free
    out_ref[...] = probs.astype(out_ref.dtype)


@functools.partial(jax.jit, static_argnames=("block_rows",))
def midpoint_classification_forward(gc_features, cls_id_map, weight, bias,
                                    block_rows=512):
    """Inference-path forward of Midpoint_Classification.

    gc_features : (B=1, emb_dim, H, W) float32   (NCHW, like PyTorch)
    cls_id_map  : (B=1, N) int                   flat H*W indices of detections
    weight      : (num_cls, emb_dim) float32     nn.Linear weight
    bias        : (num_cls,) float32             nn.Linear bias
    returns     : (N, num_cls) float32           softmax class probabilities
    """
    B, E, H, W = gc_features.shape
    assert B == 1, "inference path squeezes the batch dim (B must be 1)"
    N = cls_id_map.shape[-1]
    C = weight.shape[0]

    # --- wrapper-side gather: only N columns of the NCHW map touch HBM ------------
    fm = gc_features[0].reshape(E, H * W)                          # view, no transpose
    inds = jnp.clip(cls_id_map.reshape(-1).astype(jnp.int32), 0, H * W - 1)
    feat = jnp.take(fm, inds, axis=1).astype(jnp.bfloat16)         # (E, N), kept E-major

    # --- pad detections to a lane-friendly tile and classes to 128 lanes ----------
    # feat's detection axis is the LANE dim of its block, so TM must be a multiple
    # of 128 (block_rows default 512 already is).
    TM = min(block_rows, _round_up(N, 128))
    n_pad = _round_up(N, TM)
    C_pad = _round_up(max(C, 128), 128)

    feat_pad = jnp.pad(feat, ((0, 0), (0, n_pad - N)))             # (E, n_pad) bf16
    w_pad = jnp.zeros((E, C_pad), jnp.bfloat16).at[:, :C].set(
        jnp.asarray(weight, jnp.float32).T.astype(jnp.bfloat16))
    b_pad = jnp.full((1, C_pad), -1e30, jnp.float32).at[0, :C].set(
        jnp.asarray(bias, jnp.float32))

    # Weight/bias index_maps are constant, so their blocks stay resident in VMEM.
    # (For large E, add pipeline_mode=pl.Buffered(1) to those specs to single-buffer.)
    out = pl.pallas_call(
        _classify_kernel,
        out_shape=jax.ShapeDtypeStruct((n_pad, C_pad), jnp.bfloat16),
        grid_spec=pltpu.PrefetchScalarGridSpec(
            num_scalar_prefetch=0,
            grid=(n_pad // TM,),
            in_specs=[
                pl.BlockSpec((E, TM), lambda i: (0, i)),
                pl.BlockSpec((E, C_pad), lambda i: (0, 0)),
                pl.BlockSpec((1, C_pad), lambda i: (0, 0)),
            ],
            out_specs=pl.BlockSpec((TM, C_pad), lambda i: (i, 0)),
        ),
        compiler_params=pltpu.CompilerParams(
            dimension_semantics=("parallel",)),
    )(feat_pad, w_pad, b_pad)

    # Slice off padding and restore the module's f32 output dtype (tiny N*C cast).
    return out[:N, :C].astype(jnp.float32)


def _reference_forward(gc_features, cls_id_map, weight, bias):
    """Pure-JAX reference mirroring the PyTorch semantics (all f32)."""
    B, E, H, W = gc_features.shape
    fm = jnp.transpose(gc_features, (0, 2, 3, 1)).reshape(B, H * W, E)
    feat = fm[0, cls_id_map.reshape(-1)]                     # (N, E)
    logits = feat @ weight.T + bias                          # (N, C)
    return jax.nn.softmax(logits, axis=-1)


if __name__ == "__main__":
    # small, deterministic setup (emb_dim matches the module default of 128)
    B, emb_dim, H, W = 1, 128, 16, 16
    num_cls = 8

    key = jax.random.PRNGKey(0)
    k_feat, k_ind, k_w, k_b = jax.random.split(key, 4)

    gc_features = jax.random.normal(k_feat, (B, emb_dim, H, W), dtype=jnp.float32)

    # deterministic nn.Linear-style init: U(-1/sqrt(fan_in), 1/sqrt(fan_in))
    bound = 1.0 / (emb_dim ** 0.5)
    weight = jax.random.uniform(k_w, (num_cls, emb_dim), jnp.float32, -bound, bound)
    bias = jax.random.uniform(k_b, (num_cls,), jnp.float32, -bound, bound)

    # Case 1: N=13 (not a multiple of 128) -> exercises lane padding, single grid step.
    N1 = 13
    cls_id_map1 = jax.random.randint(k_ind, (B, N1), 0, H * W, dtype=jnp.int32)
    pred1 = jax.block_until_ready(
        midpoint_classification_forward(gc_features, cls_id_map1, weight, bias))
    ref1 = _reference_forward(gc_features, cls_id_map1, weight, bias)
    assert pred1.shape == (N1, num_cls)
    # tolerance covers the bf16 feature/weight streams + EUP approximate reciprocal
    assert jnp.allclose(pred1, ref1, atol=2e-2, rtol=2e-2), "mismatch vs JAX reference (N=13)"

    # Case 2: N=300 with block_rows=128 -> exercises multi-step grid / index_map tiling.
    N2 = 300
    cls_id_map2 = jax.random.randint(jax.random.PRNGKey(1), (B, N2), 0, H * W,
                                     dtype=jnp.int32)
    pred2 = jax.block_until_ready(
        midpoint_classification_forward(gc_features, cls_id_map2, weight, bias,
                                        block_rows=128))
    ref2 = _reference_forward(gc_features, cls_id_map2, weight, bias)
    assert pred2.shape == (N2, num_cls)
    assert jnp.allclose(pred2, ref2, atol=2e-2, rtol=2e-2), "mismatch vs JAX reference (N=300)"

    print("KERNEL_OK")
</pallas_src>

<mosaic_0001>
module attributes {stable_mosaic.version = 11 : i64} {
  func.func @_classify_kernel(%arg0: i32, %arg1: memref<128x128xbf16, #tpu.memory_space<vmem>>, %arg2: memref<128x128xbf16, #tpu.memory_space<vmem>>, %arg3: memref<1x128xf32, #tpu.memory_space<vmem>>, %arg4: memref<128x128xbf16, #tpu.memory_space<vmem>>) attributes {dimension_semantics = [#tpu.dimension_semantics<parallel>], iteration_bounds = array<i64: 1>, scalar_prefetch = 0 : i64, scratch_operands = 0 : i64, tpu.core_type = #tpu.core_type<tc>, window_params = [{transform_indices = @transform_0, window_bounds = array<i64: 128, 128>}, {pipeline_mode = #tpu.pipeline_mode<synchronous>, transform_indices = @transform_1, window_bounds = array<i64: 128, 128>}, {pipeline_mode = #tpu.pipeline_mode<synchronous>, transform_indices = @transform_2, window_bounds = array<i64: 1, 128>}, {transform_indices = @transform_3, window_bounds = array<i64: 128, 128>}]} {
    %c0 = arith.constant 0 : index
    %c0_0 = arith.constant 0 : index
    %0 = vector.load %arg1[%c0, %c0_0] : memref<128x128xbf16, #tpu.memory_space<vmem>>, vector<128x128xbf16>
    %c0_1 = arith.constant 0 : index
    %c0_2 = arith.constant 0 : index
    %1 = vector.load %arg2[%c0_1, %c0_2] : memref<128x128xbf16, #tpu.memory_space<vmem>>, vector<128x128xbf16>
    %cst = arith.constant dense<0.000000e+00> : vector<128x128xf32>
    %2 = tpu.matmul %0, %1, %cst {dimension_numbers = #tpu.dot_dimension_numbers<[0], [0], [1], [1], [0, 1, 1, 1], [], []>} : vector<128x128xbf16>, vector<128x128xbf16>, vector<128x128xf32> -> vector<128x128xf32>
    %c0_3 = arith.constant 0 : index
    %c0_4 = arith.constant 0 : index
    %3 = vector.load %arg3[%c0_3, %c0_4] : memref<1x128xf32, #tpu.memory_space<vmem>>, vector<1x128xf32>
    %4 = vector.broadcast %3 : vector<1x128xf32> to vector<128x128xf32>
    %5 = arith.addf %2, %4 : vector<128x128xf32>
    %cst_5 = arith.constant dense<0xFF800000> : vector<128xf32>
    %6 = vector.multi_reduction <maximumf>, %5, %cst_5 [1] : vector<128x128xf32> to vector<128xf32>
    %7 = vector.shape_cast %6 : vector<128xf32> to vector<128x1xf32>
    %8 = vector.broadcast %7 : vector<128x1xf32> to vector<128x128xf32>
    %9 = arith.subf %5, %8 : vector<128x128xf32>
    %10 = math.exp %9 : vector<128x128xf32>
    %cst_6 = arith.constant dense<0.000000e+00> : vector<128xf32>
    %11 = vector.multi_reduction <add>, %10, %cst_6 [1] : vector<128x128xf32> to vector<128xf32>
    %12 = vector.shape_cast %11 : vector<128xf32> to vector<128x1xf32>
    %13 = tpu.reciprocal %12 {approx = true} : vector<128x1xf32> -> vector<128x1xf32>
    %14 = vector.broadcast %13 : vector<128x1xf32> to vector<128x128xf32>
    %15 = arith.mulf %10, %14 : vector<128x128xf32>
    %16 = arith.truncf %15 : vector<128x128xf32> to vector<128x128xbf16>
    %c0_7 = arith.constant 0 : index
    %c0_8 = arith.constant 0 : index
    %17 = vector.load %arg4[%c0_7, %c0_8] : memref<128x128xbf16, #tpu.memory_space<vmem>>, vector<128x128xbf16>
    tpu.vector_store %arg4[%c0_7, %c0_8], %16 {strides = array<i32>} : memref<128x128xbf16, #tpu.memory_space<vmem>>, vector<128x128xbf16>,
    return
  }
  func.func @transform_0(%arg0: i32) -> (i32, i32) {
    %c0_i32 = arith.constant 0 : i32
    %c0_i32_0 = arith.constant 0 : i32
    return %c0_i32, %arg0 : i32, i32
  }
  func.func @transform_1(%arg0: i32) -> (i32, i32) {
    %c0_i32 = arith.constant 0 : i32
    %c0_i32_0 = arith.constant 0 : i32
    %c0_i32_1 = arith.constant 0 : i32
    return %c0_i32, %c0_i32_0 : i32, i32
  }
  func.func @transform_2(%arg0: i32) -> (i32, i32) {
    %c0_i32 = arith.constant 0 : i32
    %c0_i32_0 = arith.constant 0 : i32
    %c0_i32_1 = arith.constant 0 : i32
    return %c0_i32, %c0_i32_0 : i32, i32
  }
  func.func @transform_3(%arg0: i32) -> (i32, i32) {
    %c0_i32 = arith.constant 0 : i32
    %c0_i32_0 = arith.constant 0 : i32
    return %arg0, %c0_i32 : i32, i32
  }
}

</mosaic_0001>

<bundles_post_ra>
// kernel: midpoint_classification_forward.1
= control target key start
LH: loop header
LB: loop body
LE: loop exit
PB: predicated region body
PF: predicated region fallthrough
CT: control target
= control target key end

     0   :  { %s918_s0 = inlined_call_operand.vmem [shape: bf16[128,128], index: 0, kind: input, shape index: {}]   ;;  %s919_s1 = inlined_call_operand.vmem [shape: bf16[128,128], index: 1, kind: input, shape index: {}]   ;;  %s920_s2 = inlined_call_operand.vmem [shape: f32[1,128], index: 2, kind: input, shape index: {}]   ;;  %s921_s3 = inlined_call_operand.vmem [shape: bf16[128,128], index: 3, kind: output, shape index: {}]  }
   0x1   :  { %v651_v0 = vld [vmem:[%s918_s0] sm:$0xff]   ;;  %v652_v1 = vld [vmem:[%s918_s0 + $0x8] sm:$0xff]   ;;  %v653_v2 = vld [vmem:[%s918_s0 + $0x10] sm:$0xff]  }
   0x2   :  { %102 = vxpose.xlu0.c.b16.start [1/8] %v651_v0, 128  ;;  %v659_v3 = vld [vmem:[%s919_s1] sm:$0xff]   ;;  %v660_v4 = vld [vmem:[%s919_s1 + $0x8] sm:$0xff]   ;;  %v654_v5 = vld [vmem:[%s918_s0 + $0x18] sm:$0xff]  }
   0x3   :  { %603 = vmatprep.subr.bf16.mxu0 %v659_v3  ;;  %635 = vmatprep.subr.bf16.mxu1 %v659_v3  ;;  %v661_v6 = vld [vmem:[%s919_s1 + $0x10] sm:$0xff]   ;;  %v655_v7 = vld [vmem:[%s918_s0 + $0x20] sm:$0xff]   ;;  %v662_v8 = vld [vmem:[%s919_s1 + $0x18] sm:$0xff]  }
   0x4   :  { %604 = vmatpush3.bf16.msra.mxu0 %v659_v3  ;;  %643 = vmatpush3.bf16.msra.mxu1 %v659_v3  ;;  %v656_v9 = vld [vmem:[%s918_s0 + $0x28] sm:$0xff]   ;;  %v663_v10 = vld [vmem:[%s919_s1 + $0x20] sm:$0xff]   ;;  %v657_v11 = vld [vmem:[%s918_s0 + $0x30] sm:$0xff]  }
   0x5   :  { %605 = vmatprep.subr.bf16.mxu0 %v660_v4  ;;  %636 = vmatprep.subr.bf16.mxu1 %v660_v4  ;;  %v664_v12 = vld [vmem:[%s919_s1 + $0x28] sm:$0xff]   ;;  %v658_v13 = vld [vmem:[%s918_s0 + $0x38] sm:$0xff]   ;;  %v665_v14 = vld [vmem:[%s919_s1 + $0x30] sm:$0xff]  }
   0x6   :  { %103 = vxpose.xlu0.c.b16.cont [2/8] %v652_v1, 128  ;;  %v666_v15 = vld [vmem:[%s919_s1 + $0x38] sm:$0xff]   ;;  %v491_v24 = vld [vmem:[%s920_s2] ss:$0 sm:$0xff] }
   0x8   :  { %606 = vmatpush3.bf16.msra.mxu0 %v660_v4  ;;  %644 = vmatpush3.bf16.msra.mxu1 %v660_v4 }
   0x9   :  { %607 = vmatprep.subr.bf16.mxu0 %v661_v6  ;;  %637 = vmatprep.subr.bf16.mxu1 %v661_v6 }
   0xa   :  { %104 = vxpose.xlu0.c.b16.cont [3/8] %v653_v2, 128 }
   0xc   :  { %608 = vmatpush3.bf16.msra.mxu0 %v661_v6  ;;  %645 = vmatpush3.bf16.msra.mxu1 %v661_v6 }
   0xd   :  { %609 = vmatprep.subr.bf16.mxu0 %v662_v8  ;;  %638 = vmatprep.subr.bf16.mxu1 %v662_v8 }
   0xe   :  { %105 = vxpose.xlu0.c.b16.cont [4/8] %v654_v5, 128 }
  0x10   :  { %610 = vmatpush3.bf16.msra.mxu0 %v662_v8  ;;  %646 = vmatpush3.bf16.msra.mxu1 %v662_v8 }
  0x11   :  { %611 = vmatprep.subr.bf16.mxu0 %v663_v10  ;;  %639 = vmatprep.subr.bf16.mxu1 %v663_v10 }
  0x12   :  { %106 = vxpose.xlu0.c.b16.cont [5/8] %v655_v7, 128 }
  0x14   :  { %612 = vmatpush3.bf16.msra.mxu0 %v663_v10  ;;  %647 = vmatpush3.bf16.msra.mxu1 %v663_v10 }
  0x15   :  { %613 = vmatprep.subr.bf16.mxu0 %v664_v12  ;;  %640 = vmatprep.subr.bf16.mxu1 %v664_v12 }
  0x16   :  { %107 = vxpose.xlu0.c.b16.cont [6/8] %v656_v9, 128 }
  0x18   :  { %614 = vmatpush3.bf16.msra.mxu0 %v664_v12  ;;  %648 = vmatpush3.bf16.msra.mxu1 %v664_v12 }
  0x19   :  { %615 = vmatprep.subr.bf16.mxu0 %v665_v14  ;;  %641 = vmatprep.subr.bf16.mxu1 %v665_v14 }
  0x1a   :  { %108 = vxpose.xlu0.c.b16.cont [7/8] %v657_v11, 128 }
  0x1c   :  { %616 = vmatpush3.bf16.msra.mxu0 %v665_v14  ;;  %649 = vmatpush3.bf16.msra.mxu1 %v665_v14 }
  0x1d   :  { %617 = vmatprep.subr.bf16.mxu0 %v666_v15  ;;  %642 = vmatprep.subr.bf16.mxu1 %v666_v15 }
  0x1e   :  { %109 = vxpose.xlu0.c.b16.end [8/8] %v658_v13, 128 }
  0x20   :  { %618 = vmatpush3.bf16.msra.mxu0 %v666_v15  ;;  %650 = vmatpush3.bf16.msra.mxu1 %v666_v15 }
  0x68   :  { %v110_v16 = vpop.trf.xlu0 }
  0x69   :  { %619 = vmatprep.mubr.bf16.mxu0 %v110_v16 }
  0x6c   :  { %v111_v17 = vpop.trf.xlu0 }
  0x6d   :  { %620 = vmatmul.mubr.bf16.vlgmr.msra.gmra.mrb[0].mxu0 %v111_v17 }
  0x70   :  { %v112_v18 = vpop.trf.xlu0 }
  0x71   :  { %623 = vmatprep.mubr.bf16.mxu0 %v112_v18 }
  0x74   :  { %v113_v19 = vpop.trf.xlu0 }
  0x75   :  { %624 = vmatmul.mubr.bf16.gmra.mrb[4].mxu0 %v113_v19 }
  0x78   :  { %v114_v20 = vpop.trf.xlu0 }
  0x79   :  { %627 = vmatprep.mubr.bf16.mxu1 %v114_v20 }
  0x7c   :  { %v115_v21 = vpop.trf.xlu0 }
  0x7d   :  { %628 = vmatmul.mubr.bf16.vlgmr.msra.gmra.mrb[0].mxu1 %v115_v21 }
  0x80   :  { %v116_v22 = vpop.trf.xlu0 }
  0x81   :  { %631 = vmatprep.mubr.bf16.mxu1 %v116_v22 }
  0x84   :  { %v117_v23 = vpop.trf.xlu0 }
  0x85   :  { %632 = vmatmul.mubr.bf16.gmra.mrb[4].mxu1 %v117_v23 }
 0x140   :  { %v621_v25 = vpop.f32.mrb[0].mxu0 }
 0x141   :  { %v209_v26 = vadd.f32 %v621_v25, %v491_v24  ;;  %v200_v27 = vpop.f32.mrb[1].mxu0 }
 0x142   :  { %v622_v28 = vpop.f32.mrb[2].mxu0  ;;  %v201_v30 = vadd.f32 %v491_v24, %v200_v27 }
 0x143   :  { %267 = vmax.xlane.f32.xlu1 %v209_v26  ;;  %v203_v29 = vpop.f32.mrb[3].mxu0  ;;  %v212_v32 = vadd.f32 %v622_v28, %v491_v24 }
 0x144   :  { %v204_v36 = vadd.f32 %v491_v24, %v203_v29 }
 0x147   :  { %263 = vmax.xlane.f32.xlu1 %v201_v30 }
 0x148   :  { %v625_v31 = vpop.f32.mrb[4].mxu0 }
 0x149   :  { %v216_v33 = vpop.f32.mrb[5].mxu0  ;;  %v225_v37 = vadd.f32 %v625_v31, %v491_v24 }
 0x14a   :  { %v626_v34 = vpop.f32.mrb[6].mxu0  ;;  %v217_v43 = vadd.f32 %v491_v24, %v216_v33 }
 0x14b   :  { %269 = vmax.xlane.f32.xlu1 %v212_v32  ;;  %v219_v35 = vpop.f32.mrb[7].mxu0  ;;  %v228_v45 = vadd.f32 %v626_v34, %v491_v24 }
 0x14c   :  { %v220_v50 = vadd.f32 %v491_v24, %v219_v35 }
 0x14f   :  { %265 = vmax.xlane.f32.xlu1 %v204_v36 }
 0x150   :  { %v629_v38 = vpop.f32.mrb[0].mxu1 }
 0x151   :  { %v232_v39 = vpop.f32.mrb[1].mxu1  ;;  %v241_v52 = vadd.f32 %v629_v38, %v491_v24 }
 0x152   :  { %v802_v40 = vadd.f32 %v491_v24, %v232_v39  ;;  %v630_v41 = vpop.f32.mrb[2].mxu1 }
 0x153   :  { %275 = vmax.xlane.f32.xlu1 %v225_v37  ;;  %v235_v42 = vpop.f32.mrb[3].mxu1  ;;  %v811_v53 = vadd.f32 %v630_v41, %v491_v24 }
 0x154   :  { %279 = vmax.xlane.f32.xlu0 %v802_v40  ;;  %v814_v54 = vadd.f32 %v491_v24, %v235_v42 }
 0x157   :  { %271 = vmax.xlane.f32.xlu1 %v217_v43 }
 0x158   :  { %v633_v44 = vpop.f32.mrb[4].mxu1 }
 0x159   :  { %v248_v46 = vpop.f32.mrb[5].mxu1  ;;  %v820_v56 = vadd.f32 %v633_v44, %v491_v24 }
 0x15a   :  { %v634_v47 = vpop.f32.mrb[6].mxu1  ;;  %v817_v55 = vadd.f32 %v491_v24, %v248_v46 }
 0x15b   :  { %277 = vmax.xlane.f32.xlu1 %v228_v45  ;;  %v251_v48 = vpop.f32.mrb[7].mxu1  ;;  %v807_v51 = vadd.f32 %v634_v47, %v491_v24 }
 0x15c   :  { %v805_v49 = vadd.f32 %v491_v24, %v251_v48 }
 0x15e   :  { %289 = vmax.xlane.f32.xlu0 %v805_v49 }
 0x15f   :  { %273 = vmax.xlane.f32.xlu1 %v220_v50 }
 0x162   :  { %293 = vmax.xlane.f32.xlu0 %v807_v51 }
 0x163   :  { %283 = vmax.xlane.f32.xlu1 %v241_v52 }
 0x167   :  { %285 = vmax.xlane.f32.xlu1 %v811_v53 }
 0x16b   :  { %281 = vmax.xlane.f32.xlu1 %v814_v54 }
 0x16f   :  { %287 = vmax.xlane.f32.xlu1 %v817_v55 }
 0x173   :  { %291 = vmax.xlane.f32.xlu1 %v820_v56 }
 0x1d0   :  { %v268_v57 = vpop.xlane.xlu1 %267 }
 0x1d1   :  { %v297_v58 = vsub.f32 %v209_v26, %v268_v57 }
 0x1d3   :  { %v315_v59 = vmul.f32 1.442695, %v297_v58 }
 0x1d4   :  { %v264_v60 = vpop.xlane.xlu1 %263 }
 0x1d5   :  { %667 = vpow2.f32 %v315_v59  ;;  %v295_v61 = vsub.f32 %v201_v30, %v264_v60 }
 0x1d7   :  { %v311_v62 = vmul.f32 1.442695, %v295_v61 }
 0x1d8   :  { %v270_v63 = vpop.xlane.xlu1 %269 }
 0x1d9   :  { %669 = vpow2.f32 %v311_v62  ;;  %v298_v0 = vsub.f32 %v212_v32, %v270_v63 }
 0x1db   :  { %v317_v1 = vmul.f32 1.442695, %v298_v0 }
 0x1dc   :  { %v266_v2 = vpop.xlane.xlu1 %265 }
 0x1dd   :  { %671 = vpow2.f32 %v317_v1  ;;  %v296_v3 = vsub.f32 %v204_v36, %v266_v2 }
 0x1df   :  { %v823_v4 = vpop.eup %667  ;;  %v313_v5 = vmul.f32 1.442695, %v296_v3 }
 0x1e0   :  { %v276_v6 = vpop.xlane.xlu1 %275  ;;  %347 = vadd.xlane.f32.xlu1 %v823_v4 }
 0x1e1   :  { %673 = vpow2.f32 %v313_v5  ;;  %v301_v7 = vsub.f32 %v225_v37, %v276_v6  ;;  %v280_v19 = vpop.xlane.xlu0 %279 }
 0x1e2   :  { %v303_v23 = vsub.f32 %v802_v40, %v280_v19 }
 0x1e3   :  { %v826_v8 = vpop.eup %669  ;;  %v323_v9 = vmul.f32 1.442695, %v301_v7 }
 0x1e4   :  { %v272_v10 = vpop.xlane.xlu1 %271  ;;  %343 = vadd.xlane.f32.xlu1 %v826_v8  ;;  %v327_v29 = vmul.f32 1.442695, %v303_v23 }
 0x1e5   :  { %675 = vpow2.f32 %v323_v9  ;;  %v299_v11 = vsub.f32 %v217_v43, %v272_v10 }
 0x1e7   :  { %v829_v12 = vpop.eup %671  ;;  %v319_v13 = vmul.f32 1.442695, %v299_v11 }
 0x1e8   :  { %v278_v14 = vpop.xlane.xlu1 %277  ;;  %349 = vadd.xlane.f32.xlu0 %v829_v12 }
 0x1e9   :  { %677 = vpow2.f32 %v319_v13  ;;  %v302_v15 = vsub.f32 %v228_v45, %v278_v14 }
 0x1eb   :  { %v832_v16 = vpop.eup %673  ;;  %v325_v17 = vmul.f32 1.442695, %v302_v15  ;;  %v290_v27 = vpop.xlane.xlu0 %289 }
 0x1ec   :  { %v274_v18 = vpop.xlane.xlu1 %273  ;;  %345 = vadd.xlane.f32.xlu0 %v832_v16  ;;  %v308_v34 = vsub.f32 %v805_v49, %v290_v27 }
 0x1ed   :  { %679 = vpow2.f32 %v325_v17  ;;  %v300_v20 = vsub.f32 %v220_v50, %v274_v18 }
 0x1ee   :  { %v337_v40 = vmul.f32 1.442695, %v308_v34 }
 0x1ef   :  { %v835_v21 = vpop.eup %675  ;;  %v321_v22 = vmul.f32 1.442695, %v300_v20  ;;  %v294_v36 = vpop.xlane.xlu0 %293 }
 0x1f0   :  { %v284_v24 = vpop.xlane.xlu1 %283  ;;  %355 = vadd.xlane.f32.xlu1 %v835_v21  ;;  %v310_v41 = vsub.f32 %v807_v51, %v294_v36 }
 0x1f1   :  { %681 = vpow2.f32 %v321_v22  ;;  %v305_v25 = vsub.f32 %v241_v52, %v284_v24 }
 0x1f2   :  { %v341_v46 = vmul.f32 1.442695, %v310_v41 }
 0x1f3   :  { %v839_v26 = vpop.eup %677  ;;  %v331_v28 = vmul.f32 1.442695, %v305_v25 }
 0x1f4   :  { %v286_v30 = vpop.xlane.xlu1 %285  ;;  %351 = vadd.xlane.f32.xlu1 %v839_v26 }
 0x1f5   :  { %683 = vpow2.f32 %v331_v28  ;;  %v306_v31 = vsub.f32 %v811_v53, %v286_v30 }
 0x1f6   :  { %685 = vpow2.f32 %v327_v29 }
 0x1f7   :  { %v843_v32 = vpop.eup %679  ;;  %v333_v33 = vmul.f32 1.442695, %v306_v31 }
 0x1f8   :  { %v282_v35 = vpop.xlane.xlu1 %281  ;;  %357 = vadd.xlane.f32.xlu0 %v843_v32 }
 0x1f9   :  { %687 = vpow2.f32 %v333_v33  ;;  %v304_v37 = vsub.f32 %v814_v54, %v282_v35 }
 0x1fb   :  { %v848_v38 = vpop.eup %681  ;;  %v329_v39 = vmul.f32 1.442695, %v304_v37 }
 0x1fc   :  { %353 = vadd.xlane.f32.xlu0 %v848_v38  ;;  %v288_v42 = vpop.xlane.xlu1 %287 }
 0x1fd   :  { %689 = vpow2.f32 %v329_v39  ;;  %v307_v43 = vsub.f32 %v817_v55, %v288_v42 }
 0x1fe   :  { %691 = vpow2.f32 %v337_v40 }
 0x1ff   :  { %v853_v44 = vpop.eup %683  ;;  %v335_v45 = vmul.f32 1.442695, %v307_v43 }
 0x200   :  { %363 = vadd.xlane.f32.xlu1 %v853_v44  ;;  %v292_v47 = vpop.xlane.xlu1 %291  ;;  %v857_v49 = vpop.eup %685 }
 0x201   :  { %693 = vpow2.f32 %v335_v45  ;;  %v309_v48 = vsub.f32 %v820_v56, %v292_v47 }
 0x202   :  { %695 = vpow2.f32 %v341_v46 }
 0x203   :  { %v859_v50 = vpop.eup %687  ;;  %v339_v51 = vmul.f32 1.442695, %v309_v48 }
 0x204   :  { %365 = vadd.xlane.f32.xlu0 %v859_v50  ;;  %359 = vadd.xlane.f32.xlu1 %v857_v49 }
 0x205   :  { %697 = vpow2.f32 %v339_v51 }
 0x207   :  { %v863_v52 = vpop.eup %689 }
 0x208   :  { %361 = vadd.xlane.f32.xlu0 %v863_v52  ;;  %v866_v53 = vpop.eup %691 }
 0x20b   :  { %v868_v54 = vpop.eup %693 }
 0x20c   :  { %367 = vadd.xlane.f32.xlu1 %v868_v54  ;;  %369 = vadd.xlane.f32.xlu0 %v866_v53  ;;  %v872_v55 = vpop.eup %695 }
 0x20f   :  { %v874_v56 = vpop.eup %697 }
 0x210   :  { %371 = vadd.xlane.f32.xlu1 %v874_v56  ;;  %373 = vadd.xlane.f32.xlu0 %v872_v55 }
 0x26d   :  { %v348_v57 = vpop.xlane.xlu1 %347 }
 0x26e   :  { %699 = vrcp.f32 %v348_v57 }
 0x271   :  { %v344_v58 = vpop.xlane.xlu1 %343 }
 0x275   :  { %v350_v59 = vpop.xlane.xlu0 %349 }
 0x276   :  { %701 = vrcp.f32 %v350_v59 }
 0x277   :  { %703 = vrcp.f32 %v344_v58 }
 0x278   :  { %v700_v61 = vpop.eup %699 }
 0x279   :  { %v346_v60 = vpop.xlane.xlu0 %345  ;;  %v393_v0 = vmul.f32 %v700_v61, %v823_v4 }
 0x27a   :  { %705 = vrcp.f32 %v346_v60 }
 0x27d   :  { %v356_v62 = vpop.xlane.xlu1 %355 }
 0x27e   :  { %707 = vrcp.f32 %v356_v62 }
 0x280   :  { %v702_v63 = vpop.eup %701 }
 0x281   :  { %v394_v1 = vmul.f32 %v702_v63, %v829_v12  ;;  %v704_v2 = vpop.eup %703  ;;  %v352_v9 = vpop.xlane.xlu1 %351 }
 0x282   :  { %v391_v6 = vmul.f32 %v704_v2, %v826_v8 }
 0x283   :  { %v548_v3 = vpack.c.bf16 %v394_v1, %v393_v0 }
 0x284   :  { %v706_v5 = vpop.eup %705 }
 0x285   :  { %580 = vst [vmem:[%s921_s3 + $0x8] sm:$0xff] %v548_v3   ;;  %v392_v7 = vmul.f32 %v706_v5, %v832_v16  ;;  %v358_v10 = vpop.xlane.xlu0 %357 }
 0x286   :  { %709 = vrcp.f32 %v358_v10 }
 0x287   :  { %v543_v11 = vpack.c.bf16 %v392_v7, %v391_v6  ;;  %711 = vrcp.f32 %v352_v9 }
 0x288   :  { %v708_v13 = vpop.eup %707 }
 0x289   :  { %544 = vst [vmem:[%s921_s3] sm:$0xff] %v543_v11   ;;  %v354_v4 = vpop.xlane.xlu0 %353  ;;  %v397_v14 = vmul.f32 %v708_v13, %v835_v21 }
 0x28a   :  { %713 = vrcp.f32 %v354_v4 }
 0x28d   :  { %v364_v12 = vpop.xlane.xlu1 %363 }
 0x28e   :  { %715 = vrcp.f32 %v364_v12 }
 0x290   :  { %v710_v8 = vpop.eup %709 }
 0x291   :  { %v398_v15 = vmul.f32 %v710_v8, %v843_v32  ;;  %v360_v16 = vpop.xlane.xlu1 %359  ;;  %v366_v17 = vpop.xlane.xlu0 %365 }
 0x292   :  { %v712_v18 = vpop.eup %711  ;;  %717 = vrcp.f32 %v366_v17 }
 0x293   :  { %v558_v19 = vpack.c.bf16 %v398_v15, %v397_v14  ;;  %719 = vrcp.f32 %v360_v16  ;;  %v395_v22 = vmul.f32 %v712_v18, %v839_v26 }
 0x294   :  { %v714_v20 = vpop.eup %713 }
 0x295   :  { %582 = vst [vmem:[%s921_s3 + $0x18] sm:$0xff] %v558_v19   ;;  %v396_v23 = vmul.f32 %v714_v20, %v848_v38  ;;  %v362_v24 = vpop.xlane.xlu0 %361 }
 0x296   :  { %721 = vrcp.f32 %v362_v24 }
 0x297   :  { %v553_v21 = vpack.c.bf16 %v396_v23, %v395_v22 }
 0x298   :  { %v716_v28 = vpop.eup %715 }
 0x299   :  { %581 = vst [vmem:[%s921_s3 + $0x10] sm:$0xff] %v553_v21   ;;  %v368_v25 = vpop.xlane.xlu1 %367  ;;  %v370_v27 = vpop.xlane.xlu0 %369  ;;  %v401_v32 = vmul.f32 %v716_v28, %v853_v44 }
 0x29a   :  { %723 = vrcp.f32 %v368_v25 }
 0x29b   :  { %725 = vrcp.f32 %v370_v27 }
 0x29c   :  { %v718_v29 = vpop.eup %717 }
 0x29d   :  { %v372_v26 = vpop.xlane.xlu1 %371  ;;  %v374_v30 = vpop.xlane.xlu0 %373  ;;  %v402_v33 = vmul.f32 %v718_v29, %v859_v50 }
 0x29e   :  { %v720_v31 = vpop.eup %719  ;;  %727 = vrcp.f32 %v372_v26 }
 0x29f   :  { %729 = vrcp.f32 %v374_v30  ;;  %v568_v35 = vpack.c.bf16 %v402_v33, %v401_v32  ;;  %v399_v36 = vmul.f32 %v720_v31, %v857_v49 }
 0x2a0   :  { %v722_v34 = vpop.eup %721 }
 0x2a1   :  { %v400_v37 = vmul.f32 %v722_v34, %v863_v52  ;;  %584 = vst [vmem:[%s921_s3 + $0x28] sm:$0xff] %v568_v35  }
 0x2a3   :  { %v563_v38 = vpack.c.bf16 %v400_v37, %v399_v36 }
 0x2a4   :  { %v724_v39 = vpop.eup %723 }
 0x2a5   :  { %v726_v40 = vpop.eup %725  ;;  %583 = vst [vmem:[%s921_s3 + $0x20] sm:$0xff] %v563_v38   ;;  %v403_v41 = vmul.f32 %v724_v39, %v868_v54 }
 0x2a6   :  { %v404_v42 = vmul.f32 %v726_v40, %v866_v53 }
 0x2a8   :  { %v728_v43 = vpop.eup %727  ;;  %v573_v44 = vpack.c.bf16 %v404_v42, %v403_v41 }
 0x2a9   :  { %v730_v45 = vpop.eup %729  ;;  %v405_v46 = vmul.f32 %v728_v43, %v874_v56 }
 0x2aa   :  { %585 = vst [vmem:[%s921_s3 + $0x30] sm:$0xff] %v573_v44   ;;  %v406_v47 = vmul.f32 %v730_v45, %v872_v55 }
 0x2ac   :  { %v578_v48 = vpack.c.bf16 %v406_v47, %v405_v46 }
 0x2ae   :  { %586 = vst [vmem:[%s921_s3 + $0x38] sm:$0xff] %v578_v48  }

</bundles_post_ra>
